<compile_context>
chip_gen: v6e
topology: v6e:2x2x1
jax: 0.10.0
libtpu: 0.0.40
codegen_flags: <defaults>
</compile_context>

<pallas_src>
import functools
import math

import jax
import jax.numpy as jnp
from jax.experimental import pallas as pl
from jax.experimental.pallas import tpu as pltpu


def make_positional_encoding(embed_size: int, max_len: int = 5000) -> jnp.ndarray:
    """Deterministic sinusoidal table, identical to the PyTorch __init__ math.

    Returns pe with shape (max_len, 1, embed_size) (after unsqueeze+transpose).
    """
    position = jnp.arange(0, max_len, dtype=jnp.float32)[:, None]            # (max_len, 1)
    div_term = jnp.exp(
        jnp.arange(0, embed_size, 2, dtype=jnp.float32)
        * (-math.log(10000.0) / embed_size)
    )                                                                          # (embed/2,)
    angles = position * div_term                                               # (max_len, embed/2)
    pe = jnp.zeros((max_len, embed_size), dtype=jnp.float32)
    pe = pe.at[:, 0::2].set(jnp.sin(angles))
    pe = pe.at[:, 1::2].set(jnp.cos(angles))
    return pe[:, None, :]                                                      # (max_len, 1, embed)


def _pe_add_kernel(x_ref, pe_ref, o_ref):
    """Eval-mode body: out = x + pe (pe broadcast over batch)."""
    o_ref[...] = (x_ref[...] + pe_ref[...]).astype(o_ref.dtype)


def _pe_add_dropout_kernel(x_ref, pe_ref, bits_ref, o_ref, *, threshold, scale):
    """Training body: inverted dropout(x + pe) via integer-threshold compare."""
    y = x_ref[...] + pe_ref[...]                       # (tS, B, E) via broadcast
    keep = bits_ref[...] >= jnp.uint32(threshold)      # P(keep) = 1 - p
    o_ref[...] = jnp.where(keep, y * jnp.float32(scale), 0.0).astype(o_ref.dtype)


def _pick_block_rows(S, B, E, itemsize, target_bytes=2 * 1024 * 1024):
    """Rows per block so each x block is ~2 MiB (fits v5e scoped VMEM w/ 2x buffering)."""
    row_bytes = max(B * E * itemsize, 1)
    rows = max(1, min(S, target_bytes // row_bytes))
    if rows >= 8:
        rows = (rows // 8) * 8
    return rows


def positional_encoding_forward(x: jnp.ndarray,
                                pe: jnp.ndarray,
                                *,
                                p: float = 0.1,
                                training: bool = False,
                                rng_key=None,
                                block_rows: int | None = None) -> jnp.ndarray:
    """x: (S, B, E); pe: (max_len, 1, E) registered-buffer table. Returns (S, B, E)."""
    S, B, E = x.shape
    if block_rows is None:
        block_rows = _pick_block_rows(S, B, E, x.dtype.itemsize)
    grid = (pl.cdiv(S, block_rows),)

    x_spec = pl.BlockSpec((block_rows, B, E), lambda i: (i, 0, 0))
    pe_spec = pl.BlockSpec((block_rows, 1, E), lambda i: (i, 0, 0))   # windows of full pe
    out_spec = pl.BlockSpec((block_rows, B, E), lambda i: (i, 0, 0))

    itemsize = x.dtype.itemsize
    compiler_params = pltpu.CompilerParams(dimension_semantics=("parallel",))

    if (not training) or p <= 0.0:
        cost = pl.CostEstimate(
            flops=S * B * E,
            transcendentals=0,
            bytes_accessed=2 * S * B * E * itemsize + S * E * pe.dtype.itemsize,
        )
        return pl.pallas_call(
            _pe_add_kernel,
            out_shape=jax.ShapeDtypeStruct((S, B, E), x.dtype),
            grid=grid,
            in_specs=[x_spec, pe_spec],
            out_specs=out_spec,
            compiler_params=compiler_params,
            cost_estimate=cost,
        )(x, pe)

    # Training-mode inverted dropout. NOTE: cannot bit-match torch's RNG stream;
    # same distribution/semantics. Bits are per-element, so tiles stay independent.
    if rng_key is None:
        rng_key = jax.random.PRNGKey(0)
    bits = jax.random.bits(rng_key, (S, B, E), dtype=jnp.uint32)
    threshold = min(int(round(p * (1 << 32))), (1 << 32) - 1)
    scale = 1.0 / (1.0 - p)

    kernel = functools.partial(_pe_add_dropout_kernel, threshold=threshold, scale=scale)
    cost = pl.CostEstimate(
        flops=3 * S * B * E,
        transcendentals=0,
        bytes_accessed=3 * S * B * E * itemsize + S * E * pe.dtype.itemsize,
    )
    return pl.pallas_call(
        kernel,
        out_shape=jax.ShapeDtypeStruct((S, B, E), x.dtype),
        grid=grid,
        in_specs=[x_spec, pe_spec, x_spec],     # bits share x's tiling
        out_specs=out_spec,
        compiler_params=compiler_params,
        cost_estimate=cost,
    )(x, pe, bits)


if __name__ == "__main__":
    # Small shapes consistent with the module: seq=8, batch=2, embed=32.
    SEQ, BATCH, EMBED = 8, 2, 32
    MAX_LEN = 5000

    key = jax.random.PRNGKey(0)
    kx, kd = jax.random.split(key)
    x = jax.random.normal(kx, (SEQ, BATCH, EMBED), dtype=jnp.float32)
    pe = make_positional_encoding(EMBED, MAX_LEN)

    # Eval mode (dropout = identity): check against the plain-JAX reference.
    y_eval = positional_encoding_forward(x, pe, p=0.1, training=False)
    y_eval = jax.block_until_ready(y_eval)
    ref = x + pe[:SEQ]
    assert y_eval.shape == (SEQ, BATCH, EMBED)
    assert jnp.allclose(y_eval, ref, atol=1e-6, rtol=1e-6)

    # Multi-tile (gridded) eval case: exercises the sequence-axis pipeline.
    S2 = 24
    x2 = jax.random.normal(kx, (S2, BATCH, EMBED), dtype=jnp.float32)
    y2 = positional_encoding_forward(x2, pe, p=0.1, training=False, block_rows=8)
    y2 = jax.block_until_ready(y2)
    assert jnp.allclose(y2, x2 + pe[:S2], atol=1e-6, rtol=1e-6)

    # Training-mode dropout: each output element is either 0 or (x+pe)/(1-p).
    y_tr = positional_encoding_forward(x, pe, p=0.1, training=True, rng_key=kd)
    y_tr = jax.block_until_ready(y_tr)
    assert y_tr.shape == (SEQ, BATCH, EMBED)
    scaled = ref / (1.0 - 0.1)
    ok = jnp.isclose(y_tr, scaled, atol=1e-5) | (y_tr == 0.0)
    assert bool(jnp.all(ok))

    print("KERNEL_OK")
</pallas_src>

<mosaic_0001>
module attributes {stable_mosaic.version = 11 : i64} {
  func.func @_pe_add_kernel(%arg0: i32, %arg1: memref<8x2x32xf32, #tpu.memory_space<vmem>>, %arg2: memref<8x1x32xf32, #tpu.memory_space<vmem>>, %arg3: memref<8x2x32xf32, #tpu.memory_space<vmem>>) attributes {dimension_semantics = [#tpu.dimension_semantics<parallel>], iteration_bounds = array<i64: 1>, scalar_prefetch = 0 : i64, scratch_operands = 0 : i64, tpu.core_type = #tpu.core_type<tc>, window_params = [{transform_indices = @transform_0, window_bounds = array<i64: 8, 2, 32>}, {transform_indices = @transform_1, window_bounds = array<i64: 8, 1, 32>}, {transform_indices = @transform_2, window_bounds = array<i64: 8, 2, 32>}]} {
    %c0 = arith.constant 0 : index
    %c0_0 = arith.constant 0 : index
    %c0_1 = arith.constant 0 : index
    %0 = vector.load %arg1[%c0, %c0_0, %c0_1] : memref<8x2x32xf32, #tpu.memory_space<vmem>>, vector<8x2x32xf32>
    %c0_2 = arith.constant 0 : index
    %c0_3 = arith.constant 0 : index
    %c0_4 = arith.constant 0 : index
    %1 = vector.load %arg2[%c0_2, %c0_3, %c0_4] : memref<8x1x32xf32, #tpu.memory_space<vmem>>, vector<8x1x32xf32>
    %2 = vector.broadcast %1 : vector<8x1x32xf32> to vector<8x2x32xf32>
    %3 = arith.addf %0, %2 : vector<8x2x32xf32>
    %c0_5 = arith.constant 0 : index
    %c0_6 = arith.constant 0 : index
    %c0_7 = arith.constant 0 : index
    %4 = vector.load %arg3[%c0_5, %c0_6, %c0_7] : memref<8x2x32xf32, #tpu.memory_space<vmem>>, vector<8x2x32xf32>
    tpu.vector_store %arg3[%c0_5, %c0_6, %c0_7], %3 {strides = array<i32>} : memref<8x2x32xf32, #tpu.memory_space<vmem>>, vector<8x2x32xf32>,
    return
  }
  func.func @transform_0(%arg0: i32) -> (i32, i32, i32) {
    %c0_i32 = arith.constant 0 : i32
    %c0_i32_0 = arith.constant 0 : i32
    %c0_i32_1 = arith.constant 0 : i32
    return %arg0, %c0_i32, %c0_i32_0 : i32, i32, i32
  }
  func.func @transform_1(%arg0: i32) -> (i32, i32, i32) {
    %c0_i32 = arith.constant 0 : i32
    %c0_i32_0 = arith.constant 0 : i32
    %c0_i32_1 = arith.constant 0 : i32
    return %arg0, %c0_i32, %c0_i32_0 : i32, i32, i32
  }
  func.func @transform_2(%arg0: i32) -> (i32, i32, i32) {
    %c0_i32 = arith.constant 0 : i32
    %c0_i32_0 = arith.constant 0 : i32
    %c0_i32_1 = arith.constant 0 : i32
    return %arg0, %c0_i32, %c0_i32_0 : i32, i32, i32
  }
}

</mosaic_0001>

<bundles_post_ra>
// kernel: tpu_custom_call.1
= control target key start
LH: loop header
LB: loop body
LE: loop exit
PB: predicated region body
PF: predicated region fallthrough
CT: control target
= control target key end

     0   :  { %vm84_vm0 = vcmask 254976   ;;  %s219_s0 = inlined_call_operand.vmem [shape: f32[8,2,32], index: 0, kind: input, shape index: {}]   ;;  %s220_s1 = inlined_call_operand.vmem [shape: f32[5000,1,32], index: 1, kind: input, shape index: {}]   ;;  %s221_s2 = inlined_call_operand.hbm [shape: f32[8,2,32], index: 2, kind: output, shape index: {}]  }
   0x1   :  { %v12_v0 = vld [vmem:[%s219_s0] sm:$0x3]  ;;  %v13_v3 = vld [vmem:[%s219_s0 + $0x2] sm:$0x3]  ;;  %v14_v5 = vld [vmem:[%s219_s0 + $0x4] sm:$0x3] }
   0x2   :  { %v109_v1 = vld [vmem:[%s220_s1] ss:$0 sm:$0xff]  ;;  %v110_v4 = vld [vmem:[%s220_s1 + $0x1] ss:$0 sm:$0xff]  ;;  %v111_v7 = vld [vmem:[%s220_s1 + $0x2] ss:$0 sm:$0xff] }
   0x3   :  { %v76_v2 = vadd.f32 %v109_v1, %v12_v0  ;;  %v77_v6 = vadd.f32 %v110_v4, %v13_v3  ;;  %v15_v8 = vld [vmem:[%s219_s0 + $0x6] sm:$0x3]  ;;  %v112_v9 = vld [vmem:[%s220_s1 + $0x3] ss:$0 sm:$0xff]  ;;  %v78_v10 = vadd.f32 %v111_v7, %v14_v5  ;;  %v16_v12 = vld [vmem:[%s219_s0 + $0x8] sm:$0x3] }
   0x4   :  { %v79_v11 = vadd.f32 %v112_v9, %v15_v8  ;;  %v113_v13 = vld [vmem:[%s220_s1 + $0x4] ss:$0 sm:$0xff]  ;;  %v17_v14 = vld [vmem:[%s219_s0 + $0xa] sm:$0x3]  ;;  %v114_v16 = vld [vmem:[%s220_s1 + $0x5] ss:$0 sm:$0xff] }
   0x5   :  { %85 = vst.msk [vmem:[#allocation2] sm:$0x3] %vm84_vm0, %v76_v2  ;;  %86 = vst.msk [vmem:[#allocation2 + $0x2] sm:$0x3] %vm84_vm0, %v77_v6  ;;  %v80_v15 = vadd.f32 %v113_v13, %v16_v12  ;;  %v18_v17 = vld [vmem:[%s219_s0 + $0xc] sm:$0x3]  ;;  %v81_v19 = vadd.f32 %v114_v16, %v17_v14 }
   0x6   :  { %v115_v18 = vld [vmem:[%s220_s1 + $0x6] ss:$0 sm:$0xff]  ;;  %87 = vst.msk [vmem:[#allocation2 + $0x4] sm:$0x3] %vm84_vm0, %v78_v10  ;;  %88 = vst.msk [vmem:[#allocation2 + $0x6] sm:$0x3] %vm84_vm0, %v79_v11 }
   0x7   :  { %v82_v20 = vadd.f32 %v115_v18, %v18_v17  ;;  %v19_v21 = vld [vmem:[%s219_s0 + $0xe] sm:$0x3]  ;;  %v116_v22 = vld [vmem:[%s220_s1 + $0x7] ss:$0 sm:$0xff] }
   0x8   :  { %7 = vsyncpa [#allocation3], 0  ;;  %89 = vst.msk [vmem:[#allocation2 + $0x8] sm:$0x3] %vm84_vm0, %v80_v15  ;;  %v83_v23 = vadd.f32 %v116_v22, %v19_v21  ;;  %s142_s13 = smov [#allocation2]  }
   0x9   :  { %s98_s14 = sshll.u32 %s142_s13, 4  ;;  %90 = vst.msk [vmem:[#allocation2 + $0xa] sm:$0x3] %vm84_vm0, %v81_v19  ;;  %91 = vst.msk [vmem:[#allocation2 + $0xc] sm:$0x3] %vm84_vm0, %v82_v20  ;;  %s99_s14 = int_to_ptr.vmem [resolvable:$true] %s98_s14 }
   0xa   :  { %92 = vst.msk [vmem:[#allocation2 + $0xe] sm:$0x3] %vm84_vm0, %v83_v23  ;;  %s120_s15 = scalar_lea.vmem %s99_s14, 256  ;;  %p125_p1 = scmp.lt.s32.totalorder %s99_s14, %s99_s14 }
   0xb   :  { %p121_p0 = scmp.ne.s32.totalorder %s99_s14, %s120_s15  ;;  %p126_p2 = scmp.lt.s32.totalorder %s120_s15, %s120_s15 }
   0xd   :  { %p127_p3 = por %p126_p2, %p125_p1 }
   0xf   :  { %p128_p4 = pnand %p127_p3, %p121_p0 }
  0x11   :  { %131 = shalt.err (!%p128_p4)
}
  0x12   :  { %s143_s0 = smov 32   ;;  %s144_s1 = smov 2  }
  0x13   :  { %104 = dma.vmem_to_hbm [thread:$0]  %s99_s14, 256, %s221_s2, [#allocation3], %s143_s0, %s143_s0, %s144_s1  }
  0x14   :  { %140 = dma.done.wait [#allocation3], 256  }
  0x15   :  { %141 = vsyncadd [#allocation3], 4294967040 }
  0x16   :  { %108 = vsyncpa [#allocation3], 1 }

</bundles_post_ra>
